<compile_context>
chip_gen: v7x
topology: tpu7x:2x2x1
jax: 0.10.0
libtpu: 0.0.40
codegen_flags: <defaults>
</compile_context>

<pallas_src>
import functools

import jax
import jax.numpy as jnp
from jax.experimental import pallas as pl
from jax.experimental.pallas import tpu as pltpu

EPS = 1e-5


def _conv_block_kernel(x_ref, w1_ref, b1_ref, g1_ref, be1_ref,
                       w2_ref, b2_ref, g2_ref, be2_ref, pool_ref,
                       o_ref, *, inv_count):
    """Fused (conv3x3 -> ReLU -> BN) x 2, all lane-packed, register-resident.

    x_ref    : (N, H+2, W*Cin)      H-zero-padded, lane-packed input
    w*_ref   : (3, W*Cin_s, W*Cout) block-banded conv weights (one slab per dy)
    b*_ref   : (1, W*Cout)          conv bias, tiled over W
    g*_ref   : (1, W*Cout)          BN gamma, tiled over W
    be*_ref  : (1, W*Cout)          BN beta, tiled over W
    pool_ref : (W*Cout, W*Cout)     1 where two lanes carry the same channel
    o_ref    : (N*H, W*Cout)        lane-dense output
    """
    N, Hp, _ = x_ref.shape
    H = Hp - 2
    WC = o_ref.shape[-1]
    pool = pool_ref[...]

    def conv3(src, w_ref):
        # src: (N, H+2, K) value, already H-zero-padded.
        # 3 MXU matmuls (one per kernel row); dx structure + width padding are
        # folded into the block-banded weight slabs.
        k = src.shape[-1]
        acc = jnp.zeros((N * H, WC), jnp.float32)
        for dy in range(3):
            lhs = src[:, dy:dy + H, :].reshape(N * H, k)
            acc = acc + jnp.dot(lhs, w_ref[dy],
                                preferred_element_type=jnp.float32)
        return acc

    def relu_bn(acc, b_p, g_p, be_p):
        acc = jnp.maximum(acc + b_p, 0.0)                        # bias + ReLU
        # One-pass training-mode BN stats (biased variance) over (N, H, W).
        col = jnp.concatenate(
            [jnp.sum(acc, axis=0, keepdims=True),
             jnp.sum(acc * acc, axis=0, keepdims=True)], axis=0)  # (2, WC)
        pooled = jnp.dot(col, pool, preferred_element_type=jnp.float32)
        mean_p = pooled[0:1, :] * inv_count
        var_p = jnp.maximum(pooled[1:2, :] * inv_count - mean_p * mean_p, 0.0)
        scale_p = g_p * jax.lax.rsqrt(var_p + EPS)
        shift_p = be_p - mean_p * scale_p
        return acc * scale_p + shift_p                           # (N*H, WC)

    # ---------------- stage 1 ----------------
    x = x_ref[...].astype(jnp.float32)
    y1 = relu_bn(conv3(x, w1_ref), b1_ref[...], g1_ref[...], be1_ref[...])

    # Re-pad along H in registers (no VMEM scratch / HBM round trip).
    zrow = jnp.zeros((N, 1, WC), jnp.float32)
    y1p = jnp.concatenate([zrow, y1.reshape(N, H, WC), zrow], axis=1)

    # ---------------- stage 2 ----------------
    y2 = relu_bn(conv3(y1p, w2_ref), b2_ref[...], g2_ref[...], be2_ref[...])
    o_ref[...] = y2.astype(o_ref.dtype)


def _make_banded_weights(w_hwio, width):
    """Fold the kw/dx structure (and the width zero-padding) of a 3x3 conv
    into per-dy block-banded matrices of shape (W*Cin, W*Cout)."""
    kh, kw, cin, cout = w_hwio.shape
    w_in = jnp.arange(width)
    w_out = jnp.arange(width)
    dx = w_in[:, None] - w_out[None, :] + (kw // 2)              # (W_in, W_out)
    valid = ((dx >= 0) & (dx < kw)).astype(w_hwio.dtype)
    big = w_hwio[:, jnp.clip(dx, 0, kw - 1), :, :]               # (kh,Wi,Wo,ci,co)
    big = big * valid[None, :, :, None, None]
    big = jnp.transpose(big, (0, 1, 3, 2, 4))                    # (kh,Wi,ci,Wo,co)
    return big.reshape(kh, width * cin, width * cout)


@jax.jit
def conv_block_forward(x_nchw, params):
    """ConvBlock forward.  Input/output NCHW (PyTorch convention)."""
    N, Cin, H, W = x_nchw.shape
    Cout = params["b1"].shape[0]
    WC = W * Cout

    # NCHW -> lane-packed (N, H, W*Cin), zero-padded by one row top/bottom.
    x_packed = jnp.transpose(x_nchw, (0, 2, 3, 1)).reshape(N, H, W * Cin)
    x_hpad = jnp.pad(x_packed.astype(jnp.float32), ((0, 0), (1, 1), (0, 0)))

    big_w1 = _make_banded_weights(params["w1"].astype(jnp.float32), W)  # (3, W*Cin, WC)
    big_w2 = _make_banded_weights(params["w2"].astype(jnp.float32), W)  # (3, WC,    WC)

    def packed(v):                                               # (Cout,) -> (1, W*Cout)
        return jnp.tile(v.astype(jnp.float32), W).reshape(1, WC)

    lane_ch = jnp.arange(WC) % Cout
    pool = (lane_ch[:, None] == lane_ch[None, :]).astype(jnp.float32)

    kernel = functools.partial(_conv_block_kernel,
                               inv_count=1.0 / float(N * H * W))

    out2d = pl.pallas_call(
        kernel,
        out_shape=jax.ShapeDtypeStruct((N * H, WC), jnp.float32),
        in_specs=[pl.BlockSpec(memory_space=pltpu.MemorySpace.VMEM)] * 10,
        out_specs=pl.BlockSpec(memory_space=pltpu.MemorySpace.VMEM),
    )(x_hpad, big_w1, packed(params["b1"]), packed(params["g1"]),
      packed(params["be1"]), big_w2, packed(params["b2"]),
      packed(params["g2"]), packed(params["be2"]), pool)

    # (N*H, W*Cout) -> (N, H, W, Cout) -> NCHW
    return jnp.transpose(out2d.reshape(N, H, W, Cout), (0, 3, 1, 2))


def init_conv_block_params(key, in_channels, out_channels):
    """Deterministic params mirroring the PyTorch module's parameter shapes."""
    k1, k2, k3, k4, k5, k6 = jax.random.split(key, 6)

    def conv_init(kw, kb, cin, cout):
        fan_in = cin * 3 * 3
        bound = 1.0 / jnp.sqrt(fan_in)
        # PyTorch stores (Cout, Cin, kH, kW); we keep (kH, kW, Cin, Cout) HWIO.
        w_oihw = jax.random.uniform(kw, (cout, cin, 3, 3), jnp.float32, -bound, bound)
        b = jax.random.uniform(kb, (cout,), jnp.float32, -bound, bound)
        return jnp.transpose(w_oihw, (2, 3, 1, 0)), b

    w1, b1 = conv_init(k1, k2, in_channels, out_channels)
    w2, b2 = conv_init(k3, k4, out_channels, out_channels)
    # BatchNorm affine params (PyTorch init: gamma=1, beta=0); perturb gamma a
    # little (deterministically) so the affine path is actually exercised.
    g1 = 1.0 + 0.1 * jax.random.normal(k5, (out_channels,), jnp.float32)
    be1 = 0.1 * jax.random.normal(k6, (out_channels,), jnp.float32)
    g2 = jnp.ones((out_channels,), jnp.float32)
    be2 = jnp.zeros((out_channels,), jnp.float32)
    return dict(w1=w1, b1=b1, g1=g1, be1=be1, w2=w2, b2=b2, g2=g2, be2=be2)


def _reference_forward(x_nchw, params):
    """Pure-JAX reference (training-mode BN, two-pass variance)."""
    def stage(x, w, b, g, be):
        y = jax.lax.conv_general_dilated(
            x, w, window_strides=(1, 1), padding=((1, 1), (1, 1)),
            dimension_numbers=("NCHW", "HWIO", "NCHW"))
        y = y + b[None, :, None, None]
        y = jnp.maximum(y, 0.0)
        mean = jnp.mean(y, axis=(0, 2, 3), keepdims=True)
        var = jnp.mean((y - mean) ** 2, axis=(0, 2, 3), keepdims=True)
        y = (y - mean) * jax.lax.rsqrt(var + EPS)
        return y * g[None, :, None, None] + be[None, :, None, None]

    x = stage(x_nchw, params["w1"], params["b1"], params["g1"], params["be1"])
    x = stage(x, params["w2"], params["b2"], params["g2"], params["be2"])
    return x


if __name__ == "__main__":
    batch, in_channels, out_channels, spatial = 2, 4, 8, 16

    key = jax.random.PRNGKey(0)
    kx, kp = jax.random.split(key)
    x = jax.random.normal(kx, (batch, in_channels, spatial, spatial), jnp.float32)
    params = init_conv_block_params(kp, in_channels, out_channels)

    out = conv_block_forward(x, params)
    out = jax.block_until_ready(out)

    ref = _reference_forward(x, params)
    assert out.shape == (batch, out_channels, spatial, spatial)
    # Slightly relaxed tolerance: kernel uses one-pass (sum, sum-sq) BN stats
    # and a different (but f32) conv summation order than the lax reference.
    assert jnp.allclose(out, ref, atol=2e-4, rtol=2e-4), "mismatch vs reference"

    print("KERNEL_OK")
</pallas_src>

<mosaic_0001>
module attributes {stable_mosaic.version = 11 : i64} {
  func.func @_conv_block_kernel(%arg0: memref<2x18x64xf32, #tpu.memory_space<vmem>>, %arg1: memref<3x64x128xf32, #tpu.memory_space<vmem>>, %arg2: memref<1x128xf32, #tpu.memory_space<vmem>>, %arg3: memref<1x128xf32, #tpu.memory_space<vmem>>, %arg4: memref<1x128xf32, #tpu.memory_space<vmem>>, %arg5: memref<3x128x128xf32, #tpu.memory_space<vmem>>, %arg6: memref<1x128xf32, #tpu.memory_space<vmem>>, %arg7: memref<1x128xf32, #tpu.memory_space<vmem>>, %arg8: memref<1x128xf32, #tpu.memory_space<vmem>>, %arg9: memref<128x128xf32, #tpu.memory_space<vmem>>, %arg10: memref<32x128xf32, #tpu.memory_space<vmem>>) attributes {dimension_semantics = [], scalar_prefetch = 0 : i64, scratch_operands = 0 : i64, tpu.core_type = #tpu.core_type<tc>} {
    %c0 = arith.constant 0 : index
    %c0_0 = arith.constant 0 : index
    %0 = vector.load %arg9[%c0, %c0_0] : memref<128x128xf32, #tpu.memory_space<vmem>>, vector<128x128xf32>
    %c0_1 = arith.constant 0 : index
    %c0_2 = arith.constant 0 : index
    %c0_3 = arith.constant 0 : index
    %1 = vector.load %arg0[%c0_1, %c0_2, %c0_3] : memref<2x18x64xf32, #tpu.memory_space<vmem>>, vector<2x18x64xf32>
    %cst = arith.constant 0.000000e+00 : f32
    %2 = vector.broadcast %cst : f32 to vector<32x128xf32>
    %3 = vector.extract_strided_slice %1 {offsets = [0, 0, 0], sizes = [2, 16, 64], strides = [1, 1, 1]} : vector<2x18x64xf32> to vector<2x16x64xf32>
    %4 = vector.shape_cast %3 : vector<2x16x64xf32> to vector<32x64xf32>
    %c0_4 = arith.constant 0 : index
    %c0_5 = arith.constant 0 : index
    %c0_6 = arith.constant 0 : index
    %5 = vector.load %arg1[%c0_4, %c0_5, %c0_6] : memref<3x64x128xf32, #tpu.memory_space<vmem>>, vector<1x64x128xf32>
    %6 = vector.shape_cast %5 : vector<1x64x128xf32> to vector<64x128xf32>
    %cst_7 = arith.constant dense<0.000000e+00> : vector<32x128xf32>
    %7 = tpu.matmul %4, %6, %cst_7 {dimension_numbers = #tpu.dot_dimension_numbers<[1], [0], [0], [1], [0, 0, 1, 1], [], []>} : vector<32x64xf32>, vector<64x128xf32>, vector<32x128xf32> -> vector<32x128xf32>
    %8 = arith.addf %2, %7 : vector<32x128xf32>
    %9 = vector.extract_strided_slice %1 {offsets = [0, 1, 0], sizes = [2, 16, 64], strides = [1, 1, 1]} : vector<2x18x64xf32> to vector<2x16x64xf32>
    %10 = vector.shape_cast %9 : vector<2x16x64xf32> to vector<32x64xf32>
    %c1 = arith.constant 1 : index
    %c0_8 = arith.constant 0 : index
    %c0_9 = arith.constant 0 : index
    %11 = vector.load %arg1[%c1, %c0_8, %c0_9] : memref<3x64x128xf32, #tpu.memory_space<vmem>>, vector<1x64x128xf32>
    %12 = vector.shape_cast %11 : vector<1x64x128xf32> to vector<64x128xf32>
    %cst_10 = arith.constant dense<0.000000e+00> : vector<32x128xf32>
    %13 = tpu.matmul %10, %12, %cst_10 {dimension_numbers = #tpu.dot_dimension_numbers<[1], [0], [0], [1], [0, 0, 1, 1], [], []>} : vector<32x64xf32>, vector<64x128xf32>, vector<32x128xf32> -> vector<32x128xf32>
    %14 = arith.addf %8, %13 : vector<32x128xf32>
    %15 = vector.extract_strided_slice %1 {offsets = [0, 2, 0], sizes = [2, 16, 64], strides = [1, 1, 1]} : vector<2x18x64xf32> to vector<2x16x64xf32>
    %16 = vector.shape_cast %15 : vector<2x16x64xf32> to vector<32x64xf32>
    %c2 = arith.constant 2 : index
    %c0_11 = arith.constant 0 : index
    %c0_12 = arith.constant 0 : index
    %17 = vector.load %arg1[%c2, %c0_11, %c0_12] : memref<3x64x128xf32, #tpu.memory_space<vmem>>, vector<1x64x128xf32>
    %18 = vector.shape_cast %17 : vector<1x64x128xf32> to vector<64x128xf32>
    %cst_13 = arith.constant dense<0.000000e+00> : vector<32x128xf32>
    %19 = tpu.matmul %16, %18, %cst_13 {dimension_numbers = #tpu.dot_dimension_numbers<[1], [0], [0], [1], [0, 0, 1, 1], [], []>} : vector<32x64xf32>, vector<64x128xf32>, vector<32x128xf32> -> vector<32x128xf32>
    %20 = arith.addf %14, %19 : vector<32x128xf32>
    %c0_14 = arith.constant 0 : index
    %c0_15 = arith.constant 0 : index
    %21 = vector.load %arg2[%c0_14, %c0_15] : memref<1x128xf32, #tpu.memory_space<vmem>>, vector<1x128xf32>
    %c0_16 = arith.constant 0 : index
    %c0_17 = arith.constant 0 : index
    %22 = vector.load %arg3[%c0_16, %c0_17] : memref<1x128xf32, #tpu.memory_space<vmem>>, vector<1x128xf32>
    %c0_18 = arith.constant 0 : index
    %c0_19 = arith.constant 0 : index
    %23 = vector.load %arg4[%c0_18, %c0_19] : memref<1x128xf32, #tpu.memory_space<vmem>>, vector<1x128xf32>
    %24 = vector.broadcast %21 : vector<1x128xf32> to vector<32x128xf32>
    %25 = arith.addf %20, %24 : vector<32x128xf32>
    %cst_20 = arith.constant 0.000000e+00 : f32
    %26 = vector.broadcast %cst_20 : f32 to vector<32x128xf32>
    %27 = arith.maximumf %25, %26 : vector<32x128xf32>
    %cst_21 = arith.constant dense<0.000000e+00> : vector<128xf32>
    %28 = vector.multi_reduction <add>, %27, %cst_21 [0] : vector<32x128xf32> to vector<128xf32>
    %29 = vector.shape_cast %28 : vector<128xf32> to vector<1x128xf32>
    %30 = arith.mulf %27, %27 : vector<32x128xf32>
    %cst_22 = arith.constant dense<0.000000e+00> : vector<128xf32>
    %31 = vector.multi_reduction <add>, %30, %cst_22 [0] : vector<32x128xf32> to vector<128xf32>
    %32 = vector.shape_cast %31 : vector<128xf32> to vector<1x128xf32>
    %33 = tpu.concatenate %29, %32 in 0 : vector<1x128xf32>, vector<1x128xf32> -> vector<2x128xf32>
    %cst_23 = arith.constant dense<0.000000e+00> : vector<2x128xf32>
    %34 = tpu.matmul %33, %0, %cst_23 {dimension_numbers = #tpu.dot_dimension_numbers<[1], [0], [0], [1], [0, 0, 1, 1], [], []>} : vector<2x128xf32>, vector<128x128xf32>, vector<2x128xf32> -> vector<2x128xf32>
    %35 = vector.extract_strided_slice %34 {offsets = [0, 0], sizes = [1, 128], strides = [1, 1]} : vector<2x128xf32> to vector<1x128xf32>
    %cst_24 = arith.constant 0.001953125 : f32
    %36 = vector.broadcast %cst_24 : f32 to vector<1x128xf32>
    %37 = arith.mulf %35, %36 : vector<1x128xf32>
    %38 = vector.extract_strided_slice %34 {offsets = [1, 0], sizes = [1, 128], strides = [1, 1]} : vector<2x128xf32> to vector<1x128xf32>
    %cst_25 = arith.constant 0.001953125 : f32
    %39 = vector.broadcast %cst_25 : f32 to vector<1x128xf32>
    %40 = arith.mulf %38, %39 : vector<1x128xf32>
    %41 = arith.mulf %37, %37 : vector<1x128xf32>
    %42 = arith.subf %40, %41 : vector<1x128xf32>
    %cst_26 = arith.constant 0.000000e+00 : f32
    %43 = vector.broadcast %cst_26 : f32 to vector<1x128xf32>
    %44 = arith.maximumf %42, %43 : vector<1x128xf32>
    %cst_27 = arith.constant 9.99999974E-6 : f32
    %45 = vector.broadcast %cst_27 : f32 to vector<1x128xf32>
    %46 = arith.addf %44, %45 : vector<1x128xf32>
    %47 = math.rsqrt %46 : vector<1x128xf32>
    %48 = arith.mulf %22, %47 : vector<1x128xf32>
    %49 = arith.mulf %37, %48 : vector<1x128xf32>
    %50 = arith.subf %23, %49 : vector<1x128xf32>
    %51 = vector.broadcast %48 : vector<1x128xf32> to vector<32x128xf32>
    %52 = arith.mulf %27, %51 : vector<32x128xf32>
    %53 = vector.broadcast %50 : vector<1x128xf32> to vector<32x128xf32>
    %54 = arith.addf %52, %53 : vector<32x128xf32>
    %cst_28 = arith.constant 0.000000e+00 : f32
    %55 = vector.broadcast %cst_28 : f32 to vector<2x1x128xf32>
    %56 = vector.shape_cast %54 : vector<32x128xf32> to vector<2x16x128xf32>
    %57 = tpu.concatenate %55, %56, %55 in 1 : vector<2x1x128xf32>, vector<2x16x128xf32>, vector<2x1x128xf32> -> vector<2x18x128xf32>
    %cst_29 = arith.constant 0.000000e+00 : f32
    %58 = vector.broadcast %cst_29 : f32 to vector<32x128xf32>
    %59 = vector.extract_strided_slice %57 {offsets = [0, 0, 0], sizes = [2, 16, 128], strides = [1, 1, 1]} : vector<2x18x128xf32> to vector<2x16x128xf32>
    %60 = vector.shape_cast %59 : vector<2x16x128xf32> to vector<32x128xf32>
    %c0_30 = arith.constant 0 : index
    %c0_31 = arith.constant 0 : index
    %c0_32 = arith.constant 0 : index
    %61 = vector.load %arg5[%c0_30, %c0_31, %c0_32] : memref<3x128x128xf32, #tpu.memory_space<vmem>>, vector<1x128x128xf32>
    %62 = vector.shape_cast %61 : vector<1x128x128xf32> to vector<128x128xf32>
    %cst_33 = arith.constant dense<0.000000e+00> : vector<32x128xf32>
    %63 = tpu.matmul %60, %62, %cst_33 {dimension_numbers = #tpu.dot_dimension_numbers<[1], [0], [0], [1], [0, 0, 1, 1], [], []>} : vector<32x128xf32>, vector<128x128xf32>, vector<32x128xf32> -> vector<32x128xf32>
    %64 = arith.addf %58, %63 : vector<32x128xf32>
    %65 = vector.extract_strided_slice %57 {offsets = [0, 1, 0], sizes = [2, 16, 128], strides = [1, 1, 1]} : vector<2x18x128xf32> to vector<2x16x128xf32>
    %66 = vector.shape_cast %65 : vector<2x16x128xf32> to vector<32x128xf32>
    %c1_34 = arith.constant 1 : index
    %c0_35 = arith.constant 0 : index
    %c0_36 = arith.constant 0 : index
    %67 = vector.load %arg5[%c1_34, %c0_35, %c0_36] : memref<3x128x128xf32, #tpu.memory_space<vmem>>, vector<1x128x128xf32>
    %68 = vector.shape_cast %67 : vector<1x128x128xf32> to vector<128x128xf32>
    %cst_37 = arith.constant dense<0.000000e+00> : vector<32x128xf32>
    %69 = tpu.matmul %66, %68, %cst_37 {dimension_numbers = #tpu.dot_dimension_numbers<[1], [0], [0], [1], [0, 0, 1, 1], [], []>} : vector<32x128xf32>, vector<128x128xf32>, vector<32x128xf32> -> vector<32x128xf32>
    %70 = arith.addf %64, %69 : vector<32x128xf32>
    %71 = vector.extract_strided_slice %57 {offsets = [0, 2, 0], sizes = [2, 16, 128], strides = [1, 1, 1]} : vector<2x18x128xf32> to vector<2x16x128xf32>
    %72 = vector.shape_cast %71 : vector<2x16x128xf32> to vector<32x128xf32>
    %c2_38 = arith.constant 2 : index
    %c0_39 = arith.constant 0 : index
    %c0_40 = arith.constant 0 : index
    %73 = vector.load %arg5[%c2_38, %c0_39, %c0_40] : memref<3x128x128xf32, #tpu.memory_space<vmem>>, vector<1x128x128xf32>
    %74 = vector.shape_cast %73 : vector<1x128x128xf32> to vector<128x128xf32>
    %cst_41 = arith.constant dense<0.000000e+00> : vector<32x128xf32>
    %75 = tpu.matmul %72, %74, %cst_41 {dimension_numbers = #tpu.dot_dimension_numbers<[1], [0], [0], [1], [0, 0, 1, 1], [], []>} : vector<32x128xf32>, vector<128x128xf32>, vector<32x128xf32> -> vector<32x128xf32>
    %76 = arith.addf %70, %75 : vector<32x128xf32>
    %c0_42 = arith.constant 0 : index
    %c0_43 = arith.constant 0 : index
    %77 = vector.load %arg6[%c0_42, %c0_43] : memref<1x128xf32, #tpu.memory_space<vmem>>, vector<1x128xf32>
    %c0_44 = arith.constant 0 : index
    %c0_45 = arith.constant 0 : index
    %78 = vector.load %arg7[%c0_44, %c0_45] : memref<1x128xf32, #tpu.memory_space<vmem>>, vector<1x128xf32>
    %c0_46 = arith.constant 0 : index
    %c0_47 = arith.constant 0 : index
    %79 = vector.load %arg8[%c0_46, %c0_47] : memref<1x128xf32, #tpu.memory_space<vmem>>, vector<1x128xf32>
    %80 = vector.broadcast %77 : vector<1x128xf32> to vector<32x128xf32>
    %81 = arith.addf %76, %80 : vector<32x128xf32>
    %cst_48 = arith.constant 0.000000e+00 : f32
    %82 = vector.broadcast %cst_48 : f32 to vector<32x128xf32>
    %83 = arith.maximumf %81, %82 : vector<32x128xf32>
    %cst_49 = arith.constant dense<0.000000e+00> : vector<128xf32>
    %84 = vector.multi_reduction <add>, %83, %cst_49 [0] : vector<32x128xf32> to vector<128xf32>
    %85 = vector.shape_cast %84 : vector<128xf32> to vector<1x128xf32>
    %86 = arith.mulf %83, %83 : vector<32x128xf32>
    %cst_50 = arith.constant dense<0.000000e+00> : vector<128xf32>
    %87 = vector.multi_reduction <add>, %86, %cst_50 [0] : vector<32x128xf32> to vector<128xf32>
    %88 = vector.shape_cast %87 : vector<128xf32> to vector<1x128xf32>
    %89 = tpu.concatenate %85, %88 in 0 : vector<1x128xf32>, vector<1x128xf32> -> vector<2x128xf32>
    %cst_51 = arith.constant dense<0.000000e+00> : vector<2x128xf32>
    %90 = tpu.matmul %89, %0, %cst_51 {dimension_numbers = #tpu.dot_dimension_numbers<[1], [0], [0], [1], [0, 0, 1, 1], [], []>} : vector<2x128xf32>, vector<128x128xf32>, vector<2x128xf32> -> vector<2x128xf32>
    %91 = vector.extract_strided_slice %90 {offsets = [0, 0], sizes = [1, 128], strides = [1, 1]} : vector<2x128xf32> to vector<1x128xf32>
    %cst_52 = arith.constant 0.001953125 : f32
    %92 = vector.broadcast %cst_52 : f32 to vector<1x128xf32>
    %93 = arith.mulf %91, %92 : vector<1x128xf32>
    %94 = vector.extract_strided_slice %90 {offsets = [1, 0], sizes = [1, 128], strides = [1, 1]} : vector<2x128xf32> to vector<1x128xf32>
    %cst_53 = arith.constant 0.001953125 : f32
    %95 = vector.broadcast %cst_53 : f32 to vector<1x128xf32>
    %96 = arith.mulf %94, %95 : vector<1x128xf32>
    %97 = arith.mulf %93, %93 : vector<1x128xf32>
    %98 = arith.subf %96, %97 : vector<1x128xf32>
    %cst_54 = arith.constant 0.000000e+00 : f32
    %99 = vector.broadcast %cst_54 : f32 to vector<1x128xf32>
    %100 = arith.maximumf %98, %99 : vector<1x128xf32>
    %cst_55 = arith.constant 9.99999974E-6 : f32
    %101 = vector.broadcast %cst_55 : f32 to vector<1x128xf32>
    %102 = arith.addf %100, %101 : vector<1x128xf32>
    %103 = math.rsqrt %102 : vector<1x128xf32>
    %104 = arith.mulf %78, %103 : vector<1x128xf32>
    %105 = arith.mulf %93, %104 : vector<1x128xf32>
    %106 = arith.subf %79, %105 : vector<1x128xf32>
    %107 = vector.broadcast %104 : vector<1x128xf32> to vector<32x128xf32>
    %108 = arith.mulf %83, %107 : vector<32x128xf32>
    %109 = vector.broadcast %106 : vector<1x128xf32> to vector<32x128xf32>
    %110 = arith.addf %108, %109 : vector<32x128xf32>
    %c0_56 = arith.constant 0 : index
    %c0_57 = arith.constant 0 : index
    %111 = vector.load %arg10[%c0_56, %c0_57] : memref<32x128xf32, #tpu.memory_space<vmem>>, vector<32x128xf32>
    tpu.vector_store %arg10[%c0_56, %c0_57], %110 {strides = array<i32>} : memref<32x128xf32, #tpu.memory_space<vmem>>, vector<32x128xf32>,
    return
  }
}

</mosaic_0001>

<bundles_post_ra>
// kernel: tile.33
= control target key start
LH: loop header
LB: loop body
LE: loop exit
PB: predicated region body
PF: predicated region fallthrough
CT: control target
= control target key end

     0   :  { %s28_s0 = inlined_call_operand.vmem [shape: f32[8], index: 0, kind: input, shape index: {}]   ;;  %s29_s1 = inlined_call_operand.vmem [shape: f32[16,8], index: 1, kind: output, shape index: {}]  }
   0x1   :  { %v4_v0 = vld [vmem:[%s28_s0] ss:$0 sm:$0xff] }
   0x2   :  { %5 = vst [vmem:[%s29_s1] sm:$0xff] %v4_v0  ;;  %8 = vst [vmem:[%s29_s1 + $0x8] sm:$0xff] %v4_v0 }

// kernel: tile.34
= control target key start
LH: loop header
LB: loop body
LE: loop exit
PB: predicated region body
PF: predicated region fallthrough
CT: control target
= control target key end

     0   :  { %s131_s10 = smov 120   ;;  %s132_s11 = smov 104   ;;  %vm3_vm0 = vcmask 64512   ;;  %vm9_vm1 = vcmask 1048512   ;;  %vm15_vm2 = vcmask 982912   ;;  %vm21_vm3 = vcmask 917312   ;;  %s207_s0 = inlined_call_operand.vmem [shape: f32[16,8], index: 0, kind: input, shape index: {}]   ;;  %s208_s1 = inlined_call_operand.vmem [shape: f32[1,128], index: 1, kind: output, shape index: {}]  }
   0x1   :  { %v101_v0 = vld [vmem:[%s207_s0 + $0xf] sm:$0x1]   ;;  %v103_v1 = vld [vmem:[%s207_s0 + $0xd] sm:$0x1]   ;;  %v102_v2 = vld [vmem:[%s207_s0 + $0xe] sm:$0x1]  }
   0x2   :  { %7 = vrot.lane.b32.xlu0 %v101_v0, %s131_s10  ;;  %19 = vrot.lane.b32.xlu1 %v103_v1, %s132_s11  ;;  %v104_v3 = vld [vmem:[%s207_s0 + $0xc] sm:$0x1]   ;;  %s133_s16 = smov 112   ;;  %s134_s17 = smov 96   ;;  %v105_v4 = vld [vmem:[%s207_s0 + $0xb] sm:$0x1]  }
   0x3   :  { %v106_v5 = vld [vmem:[%s207_s0 + $0xa] sm:$0x1]   ;;  %v2_v6 = vld [vmem:[%s207_s0] sm:$0x1]   ;;  %s135_s24 = smov 88   ;;  %s136_s25 = smov 80  }
   0x4   :  { %4 = vst.msk [vmem:[#allocation0] sm:$0x1] %vm3_vm0, %v2_v6   ;;  %v107_v7 = vld [vmem:[%s207_s0 + $0x9] sm:$0x1]   ;;  %v108_v8 = vld [vmem:[%s207_s0 + $0x8] sm:$0x1]  }
   0x5   :  { %s137_s30 = smov 72   ;;  %s138_s2 = smov 64   ;;  %v109_v9 = vld [vmem:[%s207_s0 + $0x7] sm:$0x1]   ;;  %v110_v10 = vld [vmem:[%s207_s0 + $0x6] sm:$0x1]  }
   0x6   :  { %13 = vrot.lane.b32.xlu0 %v102_v2, %s133_s16  ;;  %25 = vrot.lane.b32.xlu1 %v104_v3, %s134_s17  ;;  %s139_s7 = smov 56   ;;  %s140_s8 = smov 48   ;;  %v111_v11 = vld [vmem:[%s207_s0 + $0x5] sm:$0x1]   ;;  %v112_v12 = vld [vmem:[%s207_s0 + $0x4] sm:$0x1]  }
   0x7   :  { %s141_s13 = smov 40   ;;  %s142_s14 = smov 32   ;;  %v113_v13 = vld [vmem:[%s207_s0 + $0x3] sm:$0x1]   ;;  %v114_v14 = vld [vmem:[%s207_s0 + $0x2] sm:$0x1]  }
   0x8   :  { %s143_s19 = smov 24   ;;  %s144_s20 = smov 16   ;;  %v115_v15 = vld [vmem:[%s207_s0 + $0x1] sm:$0x1]   ;;  %vm27_vm4 = vcmask 851712   ;;  %vm33_vm5 = vcmask 786112  }
   0x9   :  { %s145_s0 = smov 8   ;;  %vm39_vm6 = vcmask 720512   ;;  %vm45_vm7 = vcmask 654912   ;;  %vm51_vm8 = vcmask 589312   ;;  %vm57_vm9 = vcmask 523712  }
   0xa   :  { %31 = vrot.lane.b32.xlu0 %v105_v4, %s135_s24  ;;  %37 = vrot.lane.b32.xlu1 %v106_v5, %s136_s25  ;;  %vm63_vm10 = vcmask 458112   ;;  %vm69_vm11 = vcmask 392512   ;;  %vm75_vm12 = vcmask 326912   ;;  %vm81_vm13 = vcmask 261312  }
   0xb   :  { %vm87_vm14 = vcmask 195712   ;;  %vm93_vm15 = vcmask 130112  }
   0xe   :  { %43 = vrot.lane.b32.xlu0 %v107_v7, %s137_s30  ;;  %49 = vrot.lane.b32.xlu1 %v108_v8, %s138_s2 }
  0x12   :  { %55 = vrot.lane.b32.xlu0 %v109_v9, %s139_s7  ;;  %61 = vrot.lane.b32.xlu1 %v110_v10, %s140_s8 }
  0x16   :  { %67 = vrot.lane.b32.xlu0 %v111_v11, %s141_s13  ;;  %73 = vrot.lane.b32.xlu1 %v112_v12, %s142_s14 }
  0x1a   :  { %79 = vrot.lane.b32.xlu0 %v113_v13, %s143_s19  ;;  %85 = vrot.lane.b32.xlu1 %v114_v14, %s144_s20 }
  0x1e   :  { %91 = vrot.lane.b32.xlu0 %v115_v15, %s145_s0 }
  0x74   :  { %v8_v16 = vpop.permute.xlu0 %7   ;;  %v20_v17 = vpop.permute.xlu1 %19  }
  0x75   :  { %10 = vst.msk [vmem:[#allocation0] sm:$0x1] %vm9_vm1, %v8_v16  }
  0x78   :  { %v14_v18 = vpop.permute.xlu0 %13   ;;  %v26_v19 = vpop.permute.xlu1 %25  }
  0x79   :  { %16 = vst.msk [vmem:[#allocation0] sm:$0x1] %vm15_vm2, %v14_v18  }
  0x7a   :  { %22 = vst.msk [vmem:[#allocation0] sm:$0x1] %vm21_vm3, %v20_v17  }
  0x7b   :  { %28 = vst.msk [vmem:[#allocation0] sm:$0x1] %vm27_vm4, %v26_v19  }
  0x7c   :  { %v32_v20 = vpop.permute.xlu0 %31   ;;  %v38_v21 = vpop.permute.xlu1 %37  }
  0x7d   :  { %34 = vst.msk [vmem:[#allocation0] sm:$0x1] %vm33_vm5, %v32_v20  }
  0x7e   :  { %40 = vst.msk [vmem:[#allocation0] sm:$0x1] %vm39_vm6, %v38_v21  }
  0x80   :  { %v44_v22 = vpop.permute.xlu0 %43   ;;  %v50_v23 = vpop.permute.xlu1 %49  }
  0x81   :  { %46 = vst.msk [vmem:[#allocation0] sm:$0x1] %vm45_vm7, %v44_v22  }
  0x82   :  { %52 = vst.msk [vmem:[#allocation0] sm:$0x1] %vm51_vm8, %v50_v23  }
  0x84   :  { %v56_v24 = vpop.permute.xlu0 %55   ;;  %v62_v25 = vpop.permute.xlu1 %61  }
  0x85   :  { %58 = vst.msk [vmem:[#allocation0] sm:$0x1] %vm57_vm9, %v56_v24  }
  0x86   :  { %64 = vst.msk [vmem:[#allocation0] sm:$0x1] %vm63_vm10, %v62_v25  }
  0x88   :  { %v68_v26 = vpop.permute.xlu0 %67   ;;  %v74_v27 = vpop.permute.xlu1 %73  }
  0x89   :  { %70 = vst.msk [vmem:[#allocation0] sm:$0x1] %vm69_vm11, %v68_v26  }
  0x8a   :  { %76 = vst.msk [vmem:[#allocation0] sm:$0x1] %vm75_vm12, %v74_v27  }
  0x8c   :  { %v80_v28 = vpop.permute.xlu0 %79   ;;  %v86_v29 = vpop.permute.xlu1 %85  }
  0x8d   :  { %82 = vst.msk [vmem:[#allocation0] sm:$0x1] %vm81_vm13, %v80_v28  }
  0x8e   :  { %88 = vst.msk [vmem:[#allocation0] sm:$0x1] %vm87_vm14, %v86_v29  }
  0x90   :  { %v92_v30 = vpop.permute.xlu0 %91  }
  0x91   :  { %94 = vst.msk [vmem:[#allocation0] sm:$0x1] %vm93_vm15, %v92_v30  }
  0x98   :  { %v98_v31 = vld [vmem:[#allocation0] sm:$0x1] }
  0x99   :  { %100 = vst [vmem:[%s208_s1] sm:$0x1] %v98_v31 }

// kernel: conv_block_forward.1
= control target key start
LH: loop header
LB: loop body
LE: loop exit
PB: predicated region body
PF: predicated region fallthrough
CT: control target
= control target key end

     0   :  { %vm71_vm0 = vcmask 1046528   ;;  %vm91_vm1 = vcmask 523264   ;;  %vm278_vm2 = vcmask 1045504   ;;  %vm1746_vm3 = vmmov 0   ;;  %s2303_s1 = inlined_call_operand.vmem [shape: f32[3,64,128], index: 1, kind: input, shape index: {}]   ;;  %s2304_s0 = inlined_call_operand.vmem [shape: f32[2,18,64], index: 0, kind: input, shape index: {}]   ;;  %s2305_s9 = inlined_call_operand.vmem [shape: f32[128,128], index: 9, kind: input, shape index: {}]   ;;  %s2306_s2 = inlined_call_operand.vmem [shape: f32[1,128], index: 2, kind: input, shape index: {}]   ;;  %s2307_s5 = inlined_call_operand.vmem [shape: f32[3,128,128], index: 5, kind: input, shape index: {}]   ;;  %s2308_s3 = inlined_call_operand.vmem [shape: f32[1,128], index: 3, kind: input, shape index: {}]   ;;  %s2309_s4 = inlined_call_operand.vmem [shape: f32[1,128], index: 4, kind: input, shape index: {}]   ;;  %s2310_s6 = inlined_call_operand.vmem [shape: f32[1,128], index: 6, kind: input, shape index: {}]   ;;  %s2311_s7 = inlined_call_operand.vmem [shape: f32[1,128], index: 7, kind: input, shape index: {}]   ;;  %s2312_s8 = inlined_call_operand.vmem [shape: f32[1,128], index: 8, kind: input, shape index: {}]   ;;  %s2313_s10 = inlined_call_operand.vmem [shape: f32[32,128], index: 10, kind: output, shape index: {}]  }
   0x1   :  { %v1083_v0 = vld [vmem:[%s2303_s1 + $0x40] sm:$0xff]  ;;  %v1084_v1 = vld [vmem:[%s2303_s1 + $0x48] sm:$0xff]  ;;  %v1085_v2 = vld [vmem:[%s2303_s1 + $0x50] sm:$0xff]  ;;  %vm434_vm4 = vcmask 1040384  }
   0x2   :  { %v1529_v3 = vpack.c.bf16 %v1084_v1, %v1083_v0  ;;  %v1086_v4 = vld [vmem:[%s2303_s1 + $0x58] sm:$0xff]  ;;  %v1087_v6 = vld [vmem:[%s2303_s1 + $0x60] sm:$0xff]  ;;  %v1088_v7 = vld [vmem:[%s2303_s1 + $0x68] sm:$0xff]  ;;  %v1745_v0 = vmov 0.0|0.0  }
   0x3   :  { %v1533_v5 = vpack.c.bf16 %v1086_v4, %v1085_v2  ;;  %v1825_v8 = vld [vmem:[%s2304_s0] sm:$0xff]  ;;  %v1830_v9 = vld [vmem:[%s2304_s0 + $0x8] sm:$0xff]  ;;  %v1537_v12 = vpack.c.bf16 %v1088_v7, %v1087_v6  ;;  %v1089_v13 = vld [vmem:[%s2303_s1 + $0x70] sm:$0xff] }
   0x4   :  { %1530 = vmatprep.subr.bf16.mxu0 %v1529_v3  ;;  %v72_v10 = vrot.slane %v1825_v8, 1  ;;  %v73_v11 = vrot.slane %v1830_v9, 1  ;;  %v1090_v14 = vld [vmem:[%s2303_s1 + $0x78] sm:$0xff]  ;;  %v57_v17 = vld [vmem:[%s2303_s1] sm:$0xff]  ;;  %v1848_v18 = vld [vmem:[%s2304_s0 + $0x10] sm:$0x3] }
   0x5   :  { %1532 = vmatpush3.bf16.msra.mxu0 %v1529_v3  ;;  %v1541_v16 = vpack.c.bf16 %v1090_v14, %v1089_v13  ;;  %v58_v19 = vld [vmem:[%s2303_s1 + $0x8] sm:$0xff]  ;;  %v1856_v20 = vld [vmem:[%s2304_s0 + $0x18] sm:$0xff]  ;;  %v1861_v21 = vld [vmem:[%s2304_s0 + $0x20] sm:$0xff]  ;;  %v75_v22 = vrot.slane %v1848_v18, 1  ;;  %v279_v46 = vrot.slane %v1825_v8, 2  ;;  %v280_v47 = vrot.slane %v1830_v9, 2 }
   0x6   :  { %1534 = vmatprep.subr.bf16.mxu0 %v1533_v5  ;;  %v74_v15 = vsel %vm71_vm0, %v72_v10, %v73_v11  ;;  %v1545_v23 = vpack.c.bf16 %v58_v19, %v57_v17  ;;  %v77_v24 = vrot.slane %v1856_v20, 1  ;;  %v78_v25 = vrot.slane %v1861_v21, 1  ;;  %v1869_v26 = vld [vmem:[%s2304_s0 + $0x28] sm:$0x3]  ;;  %v59_v27 = vld [vmem:[%s2303_s1 + $0x10] sm:$0xff]  ;;  %v60_v28 = vld [vmem:[%s2303_s1 + $0x18] sm:$0xff] }
   0x7   :  { %1295 = vmatprep.mubr.msk.f32.mxu0 %vm91_vm1, %v74_v15  ;;  %v76_v29 = vsel %vm71_vm0, %v73_v11, %v75_v22  ;;  %v80_v30 = vrot.slane %v1869_v26, 1  ;;  %v1549_v31 = vpack.c.bf16 %v60_v28, %v59_v27  ;;  %v61_v33 = vld [vmem:[%s2303_s1 + $0x20] sm:$0xff]  ;;  %v62_v34 = vld [vmem:[%s2303_s1 + $0x28] sm:$0xff]  ;;  %v63_v37 = vld [vmem:[%s2303_s1 + $0x30] sm:$0xff]  ;;  %v281_v51 = vsel %vm278_vm2, %v279_v46, %v280_v47 }
   0x8   :  { %v79_v32 = vsel %vm71_vm0, %v77_v24, %v78_v25  ;;  %v1553_v36 = vpack.c.bf16 %v62_v34, %v61_v33  ;;  %v64_v38 = vld [vmem:[%s2303_s1 + $0x38] sm:$0xff]  ;;  %v1099_v40 = vld [vmem:[%s2303_s1 + $0x80] sm:$0xff]  ;;  %v1100_v41 = vld [vmem:[%s2303_s1 + $0x88] sm:$0xff]  ;;  %v282_v55 = vrot.slane %v1848_v18, 2  ;;  %v284_v56 = vrot.slane %v1856_v20, 2 }
   0x9   :  { %1536 = vmatpush3.bf16.msra.mxu0 %v1533_v5  ;;  %v81_v35 = vsel %vm71_vm0, %v78_v25, %v80_v30  ;;  %v1557_v39 = vpack.c.bf16 %v64_v38, %v63_v37  ;;  %v1561_v42 = vpack.c.bf16 %v1100_v41, %v1099_v40  ;;  %v1101_v43 = vld [vmem:[%s2303_s1 + $0x90] sm:$0xff]  ;;  %v1102_v44 = vld [vmem:[%s2303_s1 + $0x98] sm:$0xff]  ;;  %v1103_v48 = vld [vmem:[%s2303_s1 + $0xa0] sm:$0xff]  ;;  %v285_v57 = vrot.slane %v1861_v21, 2 }
   0xa   :  { %1538 = vmatprep.subr.bf16.mxu0 %v1537_v12  ;;  %v1565_v45 = vpack.c.bf16 %v1102_v44, %v1101_v43  ;;  %v1104_v49 = vld [vmem:[%s2303_s1 + $0xa8] sm:$0xff]  ;;  %v1105_v52 = vld [vmem:[%s2303_s1 + $0xb0] sm:$0xff]  ;;  %v1106_v53 = vld [vmem:[%s2303_s1 + $0xb8] sm:$0xff]  ;;  %v283_v60 = vsel %vm278_vm2, %v280_v47, %v282_v55  ;;  %v287_v61 = vrot.slane %v1869_v26, 2  ;;  %v1747_v22 = vmov 0.0  }
   0xb   :  { %v1569_v50 = vpack.c.bf16 %v1104_v49, %v1103_v48  ;;  %v1573_v54 = vpack.c.bf16 %v1106_v53, %v1105_v52  ;;  %v35_v58 = vld [vmem:[%s2305_s9] sm:$0xff]  ;;  %v36_v59 = vld [vmem:[%s2305_s9 + $0x8] sm:$0xff]  ;;  %v286_v63 = vsel %vm278_vm2, %v284_v56, %v285_v57  ;;  %v37_v2 = vld [vmem:[%s2305_s9 + $0x10] sm:$0xff] }
   0xc   :  { %v1943_v62 = vpack.c.bf16 %v36_v59, %v35_v58  ;;  %v288_v1 = vsel %vm278_vm2, %v285_v57, %v287_v61  ;;  %v38_v3 = vld [vmem:[%s2305_s9 + $0x18] sm:$0xff]  ;;  %v39_v5 = vld [vmem:[%s2305_s9 + $0x20] sm:$0xff]  ;;  %v40_v6 = vld [vmem:[%s2305_s9 + $0x28] sm:$0xff] }
   0xd   :  { %1540 = vmatpush3.bf16.msra.mxu0 %v1537_v12  ;;  %v1959_v4 = vpack.c.bf16 %v38_v3, %v37_v2  ;;  %v1969_v7 = vpack.c.bf16 %v40_v6, %v39_v5  ;;  %v43_v11 = vld [vmem:[%s2305_s9 + $0x40] sm:$0xff]  ;;  %v44_v12 = vld [vmem:[%s2305_s9 + $0x48] sm:$0xff]  ;;  %v45_v14 = vld [vmem:[%s2305_s9 + $0x50] sm:$0xff] }
   0xe   :  { %1542 = vmatprep.subr.bf16.mxu0 %v1541_v16  ;;  %v1989_v13 = vpack.c.bf16 %v44_v12, %v43_v11  ;;  %v46_v15 = vld [vmem:[%s2305_s9 + $0x58] sm:$0xff]  ;;  %v47_v17 = vld [vmem:[%s2305_s9 + $0x60] sm:$0xff]  ;;  %v48_v18 = vld [vmem:[%s2305_s9 + $0x68] sm:$0xff] }
   0xf   :  { %v1596_v19 = vpack.c.bf16 %v48_v18, %v47_v17  ;;  %v1111_v24 = vld [vmem:[%s2306_s2] ss:$0 sm:$0xff]  ;;  %v1113_v61 = vld [vmem:[%s2307_s5 + $0x88] sm:$0xff]  ;;  %v1118_v5 = vld [vmem:[%s2307_s5 + $0xb0] sm:$0xff] }
  0x10   :  { %v1116_v2 = vld [vmem:[%s2307_s5 + $0xa0] sm:$0xff]  ;;  %v1117_v3 = vld [vmem:[%s2307_s5 + $0xa8] sm:$0xff]  ;;  %v1119_v6 = vld [vmem:[%s2307_s5 + $0xb8] sm:$0xff] }
  0x11   :  { %1544 = vmatpush3.bf16.msra.mxu0 %v1541_v16  ;;  %v1999_v16 = vpack.c.bf16 %v46_v15, %v45_v14  ;;  %v1122_v11 = vld [vmem:[%s2307_s5 + $0xd0] sm:$0xff]  ;;  %v1123_v12 = vld [vmem:[%s2307_s5 + $0xd8] sm:$0xff]  ;;  %v1124_v14 = vld [vmem:[%s2307_s5 + $0xe0] sm:$0xff] }
  0x12   :  { %1546 = vmatprep.subr.bf16.mxu0 %v1545_v23  ;;  %v1125_v15 = vld [vmem:[%s2307_s5 + $0xe8] sm:$0xff]  ;;  %v1126_v17 = vld [vmem:[%s2307_s5 + $0xf0] sm:$0xff]  ;;  %v1127_v18 = vld [vmem:[%s2307_s5 + $0xf8] sm:$0xff] }
  0x13   :  { %vm2177_vm5 = vmneg %vm434_vm4 }
  0x14   :  { %1296 = vmatmul.mubr.msk.f32.vlgmr.msra.gmra.mrb[0].mxu0 %vm91_vm1, %v76_v29 }
  0x15   :  { %1548 = vmatpush3.bf16.msra.mxu0 %v1545_v23  ;;  %1298 = vmatprep.mubr.msk.f32.mxu0 %vm91_vm1, %v79_v32 }
  0x16   :  { %1550 = vmatprep.subr.bf16.mxu0 %v1549_v31 }
  0x18   :  { %1299 = vmatmul.mubr.msk.f32.gmra.mrb[2].mxu0 %vm91_vm1, %v81_v35 }
  0x19   :  { %1552 = vmatpush3.bf16.msra.mxu0 %v1549_v31  ;;  %1317 = vmatprep.mubr.msk.f32.mxu0 %vm91_vm1, %v1825_v8  ;;  %v41_v8 = vld [vmem:[%s2305_s9 + $0x30] sm:$0xff] }
  0x1a   :  { %1554 = vmatprep.subr.bf16.mxu0 %v1553_v36 }
  0x1d   :  { %1556 = vmatpush3.bf16.msra.mxu0 %v1553_v36 }
  0x1e   :  { %1558 = vmatprep.subr.bf16.mxu0 %v1557_v39 }
  0x21   :  { %1560 = vmatpush3.bf16.msra.mxu0 %v1557_v39 }
  0x22   :  { %1562 = vmatprep.subr.bf16.mxu0 %v1561_v42 }
  0x24   :  { %1318 = vmatmul.mubr.msk.f32.vlgmr.msra.gmra.mrb[0].mxu0 %vm91_vm1, %v1830_v9  ;;  %v42_v9 = vld [vmem:[%s2305_s9 + $0x38] sm:$0xff] }
  0x25   :  { %1564 = vmatpush3.bf16.msra.mxu0 %v1561_v42  ;;  %1320 = vmatprep.mubr.msk.f32.mxu0 %vm91_vm1, %v1856_v20  ;;  %v1979_v10 = vpack.c.bf16 %v42_v9, %v41_v8  ;;  %v49_v20 = vld [vmem:[%s2305_s9 + $0x70] sm:$0xff]  ;;  %v1120_v8 = vld [vmem:[%s2307_s5 + $0xc0] sm:$0xff]  ;;  %v1121_v9 = vld [vmem:[%s2307_s5 + $0xc8] sm:$0xff] }
  0x26   :  { %1566 = vmatprep.subr.bf16.mxu0 %v1565_v45 }
  0x28   :  { %1321 = vmatmul.mubr.msk.f32.gmra.mrb[2].mxu0 %vm91_vm1, %v1861_v21  ;;  %v50_v21 = vld [vmem:[%s2305_s9 + $0x78] sm:$0xff] }
  0x29   :  { %1568 = vmatpush3.bf16.msra.mxu0 %v1565_v45  ;;  %1339 = vmatprep.mubr.msk.f32.mxu0 %vm91_vm1, %v281_v51  ;;  %v1599_v23 = vpack.c.bf16 %v50_v21, %v49_v20  ;;  %v575_v20 = vld [vmem:[%s2307_s5] sm:$0xff]  ;;  %v576_v21 = vld [vmem:[%s2307_s5 + $0x8] sm:$0xff] }
  0x2a   :  { %1570 = vmatprep.subr.bf16.mxu0 %v1569_v50 }
  0x2d   :  { %1572 = vmatpush3.bf16.msra.mxu0 %v1569_v50 }
  0x2e   :  { %1574 = vmatprep.subr.bf16.mxu0 %v1573_v54 }
  0x31   :  { %1576 = vmatpush3.bf16.msra.mxu0 %v1573_v54 }
  0x32   :  { %1577 = vmatprep.subr.bf16.mxu0 %v1745_v0 }
  0x34   :  { %1340 = vmatmul.mubr.msk.f32.vlgmr.msra.gmra.mrb[0].mxu0 %vm91_vm1, %v283_v60  ;;  %v1112_v60 = vld [vmem:[%s2307_s5 + $0x80] sm:$0xff] }
  0x35   :  { %1342 = vmatprep.mubr.msk.f32.mxu0 %vm91_vm1, %v286_v63  ;;  %1579 = vmatpush3.bf16.msra.mxu0 %v1943_v62  ;;  %v1114_v63 = vld [vmem:[%s2307_s5 + $0x90] sm:$0xff] }
  0x36   :  { %1580 = vmatprep.subr.bf16.mxu0 %v1745_v0 }
  0x38   :  { %1343 = vmatmul.mubr.msk.f32.gmra.mrb[2].mxu0 %vm91_vm1, %v288_v1 }
  0x39   :  { %1582 = vmatpush3.bf16.msra.mxu0 %v1959_v4  ;;  %1377 = vmatprep.mubr.msk.f32.mxu0 %vm1746_vm3, %v1747_v22 }
  0x3a   :  { %1583 = vmatprep.subr.bf16.mxu0 %v1745_v0 }
  0x3d   :  { %1585 = vmatpush3.bf16.msra.mxu0 %v1969_v7 }
  0x3e   :  { %1586 = vmatprep.subr.bf16.mxu0 %v1745_v0 }
  0x41   :  { %1588 = vmatpush3.bf16.msra.mxu0 %v1979_v10 }
  0x42   :  { %1589 = vmatprep.subr.bf16.mxu0 %v1745_v0 }
  0x45   :  { %1591 = vmatpush3.bf16.msra.mxu0 %v1989_v13 }
  0x46   :  { %1592 = vmatprep.subr.bf16.mxu0 %v1745_v0 }
  0x49   :  { %1594 = vmatpush3.bf16.msra.mxu0 %v1999_v16 }
  0x4a   :  { %1595 = vmatprep.subr.bf16.mxu0 %v1745_v0 }
  0x4d   :  { %1597 = vmatpush3.bf16.msra.mxu0 %v1596_v19 }
  0x4e   :  { %1598 = vmatprep.subr.bf16.mxu0 %v1745_v0 }
  0x51   :  { %1600 = vmatpush3.bf16.msra.mxu0 %v1599_v23 }
  0x52   :  { %1697 = vmatprep.subr.bf16.mxu0 %v1745_v0 }
 0x107   :  { %v1341_v25 = vpop.f32.mrb[0].mxu0 }
 0x108   :  { %v405_v26 = vadd.f32 %v1341_v25, %v1111_v24  ;;  %v372_v27 = vpop.f32.mrb[1].mxu0 }
 0x109   :  { %v404_v28 = vadd.f32 %v1111_v24, %v372_v27 }
 0x10a   :  { %v2021_v29 = vmax.f32 %v405_v26, 0.0 }
 0x10b   :  { %v2023_v30 = vmax.f32 %v404_v28, 0.0  ;;  %v1344_v31 = vpop.f32.mrb[2].mxu0 }
 0x10c   :  { %v407_v32 = vadd.f32 %v1344_v31, %v1111_v24  ;;  %v382_v33 = vpop.f32.mrb[3].mxu0  ;;  %v422_v34 = vmul.f32 %v2021_v29, %v2021_v29 }
 0x10d   :  { %v421_v35 = vmul.f32 %v2023_v30, %v2023_v30  ;;  %v406_v36 = vadd.f32 %v1111_v24, %v382_v33  ;;  %v412_v37 = vadd.f32 %v2021_v29, %v2023_v30  ;;  %v1748_v33 = vmov 1966171168  }
 0x10e   :  { %v2031_v38 = vmax.f32 %v407_v32, 0.0 }
 0x10f   :  { %v2033_v39 = vmax.f32 %v406_v36, 0.0  ;;  %v425_v40 = vadd.f32 %v422_v34, %v421_v35  ;;  %v517_v34 = vunpack.c.l.s4 %v1748_v33  ;;  %v519_v35 = vlaneseq  ;;  %v583_v33 = vld [vmem:[%s2307_s5 + $0x40] sm:$0xff] }
 0x110   :  { %v424_v43 = vmul.f32 %v2031_v38, %v2031_v38 }
 0x111   :  { %v413_v41 = vadd.f32 %v412_v37, %v2033_v39  ;;  %v423_v42 = vmul.f32 %v2033_v39, %v2033_v39  ;;  %v518_v36 = vunpack.c.0.s8 %v517_v34  ;;  %v520_v37 = vshrl.u32 %v519_v35, 7  ;;  %v584_v34 = vld [vmem:[%s2307_s5 + $0x48] sm:$0xff] }
 0x112   :  { %v1649_v35 = vpack.c.bf16 %v584_v34, %v583_v33 }
 0x113   :  { %v414_v44 = vadd.f32 %v413_v41, %v2031_v38  ;;  %v426_v45 = vadd.f32 %v425_v40, %v423_v42  ;;  %v2113_v40 = vsub.s32 %v518_v36, %v520_v37  ;;  %v585_v36 = vld [vmem:[%s2307_s5 + $0x50] sm:$0xff] }
 0x115   :  { %v415_v46 = vrot.slane %v414_v44, 4  ;;  %v427_v47 = vadd.f32 %v426_v45, %v424_v43 }
 0x117   :  { %v416_v48 = vadd.f32 %v415_v46, %v414_v44  ;;  %v428_v49 = vrot.slane %v427_v47, 4  ;;  %v396_v44 = vld [vmem:[%s2308_s3] sm:$0x1]  ;;  %v2120_v46 = vsub.s32 0, %v520_v37  ;;  %v586_v37 = vld [vmem:[%s2307_s5 + $0x58] sm:$0xff] }
 0x119   :  { %v417_v50 = vrot.slane %v416_v48, 2  ;;  %v429_v51 = vadd.f32 %v428_v49, %v427_v47 }
 0x11b   :  { %v418_v52 = vadd.f32 %v417_v50, %v416_v48  ;;  %v430_v53 = vrot.slane %v429_v51, 2  ;;  %v397_v48 = vld [vmem:[%s2309_s4] sm:$0x1] }
 0x11d   :  { %v419_v54 = vrot.slane %v418_v52, 1  ;;  %v431_v55 = vadd.f32 %v430_v53, %v429_v51 }
 0x11f   :  { %v432_v56 = vrot.slane %v431_v55, 1  ;;  %v420_v57 = vadd.f32 %v419_v54, %v418_v52 }
 0x121   :  { %v433_v58 = vadd.f32 %v432_v56, %v431_v55 }
 0x123   :  { %v435_v59 = vsel %vm434_vm4, %v420_v57, %v433_v58 }
 0x124   :  { %1378 = vmatmul.mubr.f32.vlgmr.msra.gmra.mrb[4].mxu0 %v435_v59 }
 0x125   :  { %1699 = vmatpush3.bf16.msra.mxu0 %v1943_v62  ;;  %1526 = vmatprep.mubr.msk.f32.mxu0 %vm1746_vm3, %v1747_v22  ;;  %v1601_v62 = vpack.c.bf16 %v1113_v61, %v1112_v60  ;;  %v2110_v22 = vpack.c.bf16 %v576_v21, %v575_v20 }
 0x126   :  { %1700 = vmatprep.subr.bf16.mxu0 %v1745_v0 }
 0x127   :  { %1602 = vmatprep.subr.bf16.mxu1 %v1601_v62 }
 0x128   :  { %1604 = vmatpush3.bf16.msra.mxu1 %v1601_v62 }
 0x129   :  { %1702 = vmatpush3.bf16.msra.mxu0 %v1959_v4  ;;  %v1609_v4 = vpack.c.bf16 %v1117_v3, %v1116_v2 }
 0x12a   :  { %1703 = vmatprep.subr.bf16.mxu0 %v1745_v0 }
 0x12d   :  { %1705 = vmatpush3.bf16.msra.mxu0 %v1969_v7  ;;  %v1613_v7 = vpack.c.bf16 %v1119_v6, %v1118_v5 }
 0x12e   :  { %1706 = vmatprep.subr.bf16.mxu0 %v1745_v0 }
 0x131   :  { %1708 = vmatpush3.bf16.msra.mxu0 %v1979_v10  ;;  %v1617_v10 = vpack.c.bf16 %v1121_v9, %v1120_v8 }
 0x132   :  { %1709 = vmatprep.subr.bf16.mxu0 %v1745_v0 }
 0x135   :  { %1711 = vmatpush3.bf16.msra.mxu0 %v1989_v13  ;;  %v1621_v13 = vpack.c.bf16 %v1123_v12, %v1122_v11 }
 0x136   :  { %1712 = vmatprep.subr.bf16.mxu0 %v1745_v0 }
 0x139   :  { %1714 = vmatpush3.bf16.msra.mxu0 %v1999_v16  ;;  %v1625_v16 = vpack.c.bf16 %v1125_v15, %v1124_v14  ;;  %v579_v15 = vld [vmem:[%s2307_s5 + $0x20] sm:$0xff] }
 0x13a   :  { %1715 = vmatprep.subr.bf16.mxu0 %v1745_v0 }
 0x13d   :  { %1717 = vmatpush3.bf16.msra.mxu0 %v1596_v19  ;;  %v1629_v19 = vpack.c.bf16 %v1127_v18, %v1126_v17 }
 0x13e   :  { %1718 = vmatprep.subr.bf16.mxu0 %v1745_v0  ;;  %v1115_v0 = vld [vmem:[%s2307_s5 + $0x98] sm:$0xff] }
 0x13f   :  { %v1605_v1 = vpack.c.bf16 %v1115_v0, %v1114_v63 }
 0x141   :  { %1720 = vmatpush3.bf16.msra.mxu0 %v1599_v23  ;;  %1606 = vmatprep.subr.bf16.mxu1 %v1605_v1 }
 0x142   :  { %1608 = vmatpush3.bf16.msra.mxu1 %v1605_v1 }
 0x143   :  { %1610 = vmatprep.subr.bf16.mxu1 %v1609_v4 }
 0x146   :  { %1612 = vmatpush3.bf16.msra.mxu1 %v1609_v4 }
 0x147   :  { %1614 = vmatprep.subr.bf16.mxu1 %v1613_v7 }
 0x14a   :  { %1616 = vmatpush3.bf16.msra.mxu1 %v1613_v7 }
 0x14b   :  { %1618 = vmatprep.subr.bf16.mxu1 %v1617_v10 }
 0x14e   :  { %1620 = vmatpush3.bf16.msra.mxu1 %v1617_v10 }
 0x14f   :  { %1622 = vmatprep.subr.bf16.mxu1 %v1621_v13 }
 0x152   :  { %1624 = vmatpush3.bf16.msra.mxu1 %v1621_v13 }
 0x153   :  { %1626 = vmatprep.subr.bf16.mxu1 %v1625_v16 }
 0x156   :  { %1628 = vmatpush3.bf16.msra.mxu1 %v1625_v16  ;;  %v580_v16 = vld [vmem:[%s2307_s5 + $0x28] sm:$0xff] }
 0x157   :  { %1630 = vmatprep.subr.bf16.mxu1 %v1629_v19 }
 0x15a   :  { %1632 = vmatpush3.bf16.msra.mxu1 %v1629_v19 }
 0x15b   :  { %1634 = vmatprep.subr.bf16.mxu1 %v2110_v22 }
 0x1f7   :  { %v502_v23 = vpop.f32.mrb[4].mxu0 }
 0x1f8   :  { %v506_v24 = vmul.f32 0.001953125, %v502_v23  ;;  %v1379_v25 = vpop.f32.mrb[5].mxu0 }
 0x1fa   :  { %v507_v26 = vmul.f32 %v506_v24, %v506_v24 }
 0x1fc   :  { %v509_v27 = vrot.slane %v507_v26, 7  ;;  %v1641_v26 = vpack.c.bf16 %v580_v16, %v579_v15 }
 0x1fe   :  { %v511_v28 = vsub.f32 %v506_v24, %v509_v27 }
 0x200   :  { %v512_v31 = vmax.f32 %v511_v28, 0.0  ;;  %v581_v28 = vld [vmem:[%s2307_s5 + $0x30] sm:$0xff] }
 0x202   :  { %v513_v32 = vadd.f32 1e-05, %v512_v31  ;;  %v582_v31 = vld [vmem:[%s2307_s5 + $0x38] sm:$0xff] }
 0x204   :  { %1741 = vrsqrt.f32 %v513_v32  ;;  %v1645_v32 = vpack.c.bf16 %v582_v31, %v581_v28 }
 0x20e   :  { %v1742_v41 = vpop.eup %1741 }
 0x20f   :  { %v522_v42 = vrot.slane %v1742_v41, %v2113_v40  ;;  %v1653_v41 = vpack.c.bf16 %v586_v37, %v585_v36 }
 0x211   :  { %v523_v43 = vcombine.high %v522_v42, %v522_v42  ;;  %v587_v42 = vld [vmem:[%s2307_s5 + $0x60] sm:$0xff] }
 0x213   :  { %v530_v45 = vrot.slane %v523_v43, %v2113_v40  ;;  %v588_v43 = vld [vmem:[%s2307_s5 + $0x68] sm:$0xff] }
 0x215   :  { %v532_v47 = vmul.f32 %v530_v45, %v396_v44  ;;  %v1657_v44 = vpack.c.bf16 %v588_v43, %v587_v42  ;;  %v589_v45 = vld [vmem:[%s2307_s5 + $0x70] sm:$0xff] }
 0x217   :  { %v533_v49 = vmul.f32 %v532_v47, %v506_v24  ;;  %v539_v50 = vrot.slane %v532_v47, %v2120_v46  ;;  %v590_v47 = vld [vmem:[%s2307_s5 + $0x78] sm:$0xff] }
 0x219   :  { %v534_v51 = vsub.f32 %v397_v48, %v533_v49  ;;  %v541_v52 = vmul.f32 %v539_v50, %v2023_v30  ;;  %v542_v54 = vmul.f32 %v539_v50, %v2021_v29  ;;  %v543_v55 = vmul.f32 %v539_v50, %v2033_v39  ;;  %v577_v30 = vld [vmem:[%s2307_s5 + $0x10] sm:$0xff]  ;;  %v578_v29 = vld [vmem:[%s2307_s5 + $0x18] sm:$0xff]  ;;  %v1132_v49 = vld [vmem:[%s2307_s5 + $0x100] sm:$0xff] }
 0x21a   :  { %v544_v56 = vmul.f32 %v539_v50, %v2031_v38  ;;  %v1637_v6 = vpack.c.bf16 %v578_v29, %v577_v30  ;;  %v1661_v48 = vpack.c.bf16 %v590_v47, %v589_v45  ;;  %v1133_v50 = vld [vmem:[%s2307_s5 + $0x108] sm:$0xff]  ;;  %v1142_v29 = vld [vmem:[%s2307_s5 + $0x150] sm:$0xff] }
 0x21b   :  { %v549_v53 = vrot.slane %v534_v51, %v2120_v46  ;;  %v1665_v51 = vpack.c.bf16 %v1133_v50, %v1132_v49 }
 0x21d   :  { %v551_v57 = vadd.f32 %v549_v53, %v541_v52  ;;  %v552_v58 = vadd.f32 %v549_v53, %v542_v54  ;;  %v553_v59 = vadd.f32 %v549_v53, %v543_v55  ;;  %v554_v60 = vadd.f32 %v549_v53, %v544_v56  ;;  %v1134_v52 = vld [vmem:[%s2307_s5 + $0x110] sm:$0xff]  ;;  %v1135_v53 = vld [vmem:[%s2307_s5 + $0x118] sm:$0xff]  ;;  %v1136_v55 = vld [vmem:[%s2307_s5 + $0x120] sm:$0xff] }
 0x21e   :  { %v1669_v54 = vpack.c.bf16 %v1135_v53, %v1134_v52  ;;  %v1137_v56 = vld [vmem:[%s2307_s5 + $0x128] sm:$0xff] }
 0x21f   :  { %v559_v61 = vrot.slane %v551_v57, 7  ;;  %v560_v62 = vrot.slane %v552_v58, 7  ;;  %v2131_v63 = vrot.slane %v553_v59, 7  ;;  %v563_v0 = vrot.slane %v554_v60, 7  ;;  %v1138_v59 = vld [vmem:[%s2307_s5 + $0x130] sm:$0xff]  ;;  %v1139_v60 = vld [vmem:[%s2307_s5 + $0x138] sm:$0xff] }
 0x220   :  { %v1673_v58 = vpack.c.bf16 %v1137_v56, %v1136_v55 }
 0x221   :  { %v2140_v39 = vsel %vm434_vm4, %v559_v61, %v560_v62  ;;  %v2143_v38 = vsel %vm434_vm4, 0.0, %v559_v61  ;;  %v573_v1 = vsel %vm434_vm4, %v560_v62, 0.0  ;;  %v2148_v2 = vsel %vm434_vm4, %v2131_v63, %v563_v0 }
 0x222   :  { %v595_v3 = vrot.slane %v2143_v38, 1  ;;  %v596_v4 = vrot.slane %v2140_v39, 1  ;;  %v598_v5 = vrot.slane %v573_v1, 1  ;;  %v799_v7 = vrot.slane %v573_v1, 2  ;;  %v1144_v1 = vld [vmem:[%s2307_s5 + $0x160] sm:$0xff] }
 0x223   :  { %v572_v8 = vsel %vm434_vm4, 0.0, %v2131_v63  ;;  %v601_v9 = vrot.slane %v2148_v2, 1  ;;  %v574_v10 = vsel %vm434_vm4, %v563_v0, 0.0  ;;  %v797_v17 = vrot.slane %v2140_v39, 2  ;;  %v1141_v0 = vld [vmem:[%s2307_s5 + $0x148] sm:$0xff] }
 0x224   :  { %v597_v11 = vsel %vm71_vm0, %v595_v3, %v596_v4  ;;  %v599_v12 = vsel %vm71_vm0, %v596_v4, %v598_v5  ;;  %v600_v13 = vrot.slane %v572_v8, 1  ;;  %v603_v14 = vrot.slane %v574_v10, 1  ;;  %v1146_v4 = vld [vmem:[%s2307_s5 + $0x170] sm:$0xff]  ;;  %v1147_v5 = vld [vmem:[%s2307_s5 + $0x178] sm:$0xff] }
 0x225   :  { %1412 = vmatprep.mubr.f32.mxu1 %v597_v11  ;;  %v801_v18 = vrot.slane %v572_v8, 2  ;;  %v802_v19 = vrot.slane %v2148_v2, 2  ;;  %v804_v20 = vrot.slane %v574_v10, 2  ;;  %v2171_v23 = vsel %vm278_vm2, %v797_v17, %v799_v7  ;;  %v1148_v7 = vld [vmem:[%s2310_s6] ss:$0 sm:$0xff] }
 0x226   :  { %1413 = vmatmul.mubr.f32.vlgmr.msra.gmra.mrb[0].mxu1 %v599_v12  ;;  %v602_v21 = vsel %vm71_vm0, %v600_v13, %v601_v9  ;;  %v796_v57 = vrot.slane %v2143_v38, 2  ;;  %v1677_v62 = vpack.c.bf16 %v1139_v60, %v1138_v59  ;;  %v917_v60 = vld [vmem:[%s2311_s7] sm:$0x1] }
 0x227   :  { %1636 = vmatpush3.bf16.msra.mxu1 %v2110_v22  ;;  %1415 = vmatprep.mubr.f32.mxu1 %v602_v21  ;;  %v2174_v24 = vsel %vm278_vm2, %v801_v18, %v802_v19  ;;  %v2182_v27 = vsel %vm278_vm2, %v802_v19, %v804_v20  ;;  %v604_v22 = vsel %vm71_vm0, %v601_v9, %v603_v14 }
 0x228   :  { %1638 = vmatprep.subr.bf16.mxu1 %v1637_v6 }
 0x22a   :  { %1416 = vmatmul.mubr.f32.gmra.mrb[2].mxu1 %v604_v22 }
 0x22b   :  { %1640 = vmatpush3.bf16.msra.mxu1 %v1637_v6  ;;  %1450 = vmatprep.mubr.msk.f32.mxu1 %vm2177_vm5, %v559_v61  ;;  %v798_v61 = vsel %vm278_vm2, %v796_v57, %v797_v17  ;;  %v1693_v6 = vpack.c.bf16 %v1147_v5, %v1146_v4 }
 0x22c   :  { %1642 = vmatprep.subr.bf16.mxu1 %v1641_v26 }
 0x22f   :  { %1644 = vmatpush3.bf16.msra.mxu1 %v1641_v26 }
 0x230   :  { %1646 = vmatprep.subr.bf16.mxu1 %v1645_v32 }
 0x233   :  { %1648 = vmatpush3.bf16.msra.mxu1 %v1645_v32 }
 0x234   :  { %1650 = vmatprep.subr.bf16.mxu1 %v1649_v35 }
 0x237   :  { %1652 = vmatpush3.bf16.msra.mxu1 %v1649_v35 }
 0x238   :  { %1654 = vmatprep.subr.bf16.mxu1 %v1653_v41 }
 0x23b   :  { %1656 = vmatpush3.bf16.msra.mxu1 %v1653_v41 }
 0x23c   :  { %1658 = vmatprep.subr.bf16.mxu1 %v1657_v44 }
 0x23f   :  { %1660 = vmatpush3.bf16.msra.mxu1 %v1657_v44 }
 0x240   :  { %1662 = vmatprep.subr.bf16.mxu1 %v1661_v48 }
 0x243   :  { %1664 = vmatpush3.bf16.msra.mxu1 %v1661_v48 }
 0x244   :  { %1666 = vmatprep.subr.bf16.mxu1 %v1665_v51 }
 0x246   :  { %1451 = vmatmul.mubr.f32.vlgmr.msra.gmra.mrb[0].mxu1 %v2140_v39  ;;  %v1143_v39 = vld [vmem:[%s2307_s5 + $0x158] sm:$0xff] }
 0x247   :  { %1453 = vmatprep.mubr.msk.f32.mxu1 %vm2177_vm5, %v2131_v63  ;;  %1668 = vmatpush3.bf16.msra.mxu1 %v1665_v51  ;;  %v1140_v63 = vld [vmem:[%s2307_s5 + $0x140] sm:$0xff]  ;;  %v1685_v38 = vpack.c.bf16 %v1143_v39, %v1142_v29 }
 0x248   :  { %1670 = vmatprep.subr.bf16.mxu1 %v1669_v54  ;;  %v1681_v30 = vpack.c.bf16 %v1141_v0, %v1140_v63  ;;  %v918_v63 = vld [vmem:[%s2312_s8] sm:$0x1] }
 0x24a   :  { %1454 = vmatmul.mubr.f32.gmra.mrb[2].mxu1 %v2148_v2  ;;  %v1145_v2 = vld [vmem:[%s2307_s5 + $0x168] sm:$0xff] }
 0x24b   :  { %1672 = vmatpush3.bf16.msra.mxu1 %v1669_v54  ;;  %1488 = vmatprep.mubr.f32.mxu1 %v798_v61  ;;  %v1689_v3 = vpack.c.bf16 %v1145_v2, %v1144_v1 }
 0x24c   :  { %1674 = vmatprep.subr.bf16.mxu1 %v1673_v58 }
 0x24f   :  { %1676 = vmatpush3.bf16.msra.mxu1 %v1673_v58 }
 0x250   :  { %1678 = vmatprep.subr.bf16.mxu1 %v1677_v62 }
 0x253   :  { %1680 = vmatpush3.bf16.msra.mxu1 %v1677_v62 }
 0x254   :  { %1682 = vmatprep.subr.bf16.mxu1 %v1681_v30 }
 0x257   :  { %1684 = vmatpush3.bf16.msra.mxu1 %v1681_v30 }
 0x258   :  { %1686 = vmatprep.subr.bf16.mxu1 %v1685_v38 }
 0x25b   :  { %1688 = vmatpush3.bf16.msra.mxu1 %v1685_v38 }
 0x25c   :  { %1690 = vmatprep.subr.bf16.mxu1 %v1689_v3 }
 0x25f   :  { %1692 = vmatpush3.bf16.msra.mxu1 %v1689_v3 }
 0x260   :  { %1694 = vmatprep.subr.bf16.mxu1 %v1693_v6 }
 0x263   :  { %1696 = vmatpush3.bf16.msra.mxu1 %v1693_v6 }
 0x266   :  { %1489 = vmatmul.mubr.f32.vlgmr.msra.gmra.mrb[0].mxu1 %v2171_v23 }
 0x267   :  { %1491 = vmatprep.mubr.f32.mxu1 %v2174_v24 }
 0x26a   :  { %1492 = vmatmul.mubr.f32.gmra.mrb[2].mxu1 %v2182_v27 }
 0x339   :  { %v1490_v8 = vpop.f32.mrb[0].mxu1 }
 0x33a   :  { %v926_v9 = vadd.f32 %v1490_v8, %v1148_v7  ;;  %v893_v10 = vpop.f32.mrb[1].mxu1 }
 0x33b   :  { %v925_v11 = vadd.f32 %v1148_v7, %v893_v10 }
 0x33c   :  { %v930_v12 = vmax.f32 %v926_v9, 0.0 }
 0x33d   :  { %v929_v13 = vmax.f32 %v925_v11, 0.0  ;;  %v1493_v14 = vpop.f32.mrb[2].mxu1 }
 0x33e   :  { %v928_v15 = vadd.f32 %v1493_v14, %v1148_v7  ;;  %v903_v16 = vpop.f32.mrb[3].mxu1  ;;  %v943_v17 = vmul.f32 %v930_v12, %v930_v12 }
 0x33f   :  { %v942_v18 = vmul.f32 %v929_v13, %v929_v13  ;;  %v927_v19 = vadd.f32 %v1148_v7, %v903_v16  ;;  %v933_v20 = vadd.f32 %v930_v12, %v929_v13 }
 0x340   :  { %v932_v21 = vmax.f32 %v928_v15, 0.0 }
 0x341   :  { %v931_v23 = vmax.f32 %v927_v19, 0.0  ;;  %v946_v24 = vadd.f32 %v943_v17, %v942_v18 }
 0x342   :  { %v945_v27 = vmul.f32 %v932_v21, %v932_v21 }
 0x343   :  { %v934_v25 = vadd.f32 %v933_v20, %v931_v23  ;;  %v944_v26 = vmul.f32 %v931_v23, %v931_v23 }
 0x345   :  { %v935_v22 = vadd.f32 %v934_v25, %v932_v21  ;;  %v947_v28 = vadd.f32 %v946_v24, %v944_v26 }
 0x347   :  { %v936_v31 = vrot.slane %v935_v22, 4  ;;  %v948_v32 = vadd.f32 %v947_v28, %v945_v27 }
 0x349   :  { %v937_v33 = vadd.f32 %v936_v31, %v935_v22  ;;  %v949_v34 = vrot.slane %v948_v32, 4 }
 0x34b   :  { %v938_v35 = vrot.slane %v937_v33, 2  ;;  %v950_v36 = vadd.f32 %v949_v34, %v948_v32 }
 0x34d   :  { %v939_v37 = vadd.f32 %v938_v35, %v937_v33  ;;  %v951_v41 = vrot.slane %v950_v36, 2 }
 0x34f   :  { %v940_v42 = vrot.slane %v939_v37, 1  ;;  %v952_v43 = vadd.f32 %v951_v41, %v950_v36 }
 0x351   :  { %v953_v44 = vrot.slane %v952_v43, 1  ;;  %v941_v45 = vadd.f32 %v940_v42, %v939_v37 }
 0x353   :  { %v954_v47 = vadd.f32 %v953_v44, %v952_v43 }
 0x355   :  { %v955_v48 = vsel %vm434_vm4, %v941_v45, %v954_v47 }
 0x356   :  { %1527 = vmatmul.mubr.f32.vlgmr.msra.gmra.mrb[6].mxu0 %v955_v48 }
 0x429   :  { %v1022_v49 = vpop.f32.mrb[6].mxu0 }
 0x42a   :  { %v1026_v50 = vmul.f32 0.001953125, %v1022_v49  ;;  %v1528_v51 = vpop.f32.mrb[7].mxu0 }
 0x42c   :  { %v1027_v52 = vmul.f32 %v1026_v50, %v1026_v50 }
 0x42e   :  { %v1029_v53 = vrot.slane %v1027_v52, 7 }
 0x430   :  { %v1031_v54 = vsub.f32 %v1026_v50, %v1029_v53 }
 0x432   :  { %v1032_v55 = vmax.f32 %v1031_v54, 0.0 }
 0x434   :  { %v1033_v56 = vadd.f32 1e-05, %v1032_v55 }
 0x436   :  { %1743 = vrsqrt.f32 %v1033_v56 }
 0x440   :  { %v1744_v57 = vpop.eup %1743 }
 0x441   :  { %v1042_v58 = vrot.slane %v1744_v57, %v2113_v40 }
 0x443   :  { %v1043_v59 = vcombine.high %v1042_v58, %v1042_v58 }
 0x445   :  { %v1050_v61 = vrot.slane %v1043_v59, %v2113_v40 }
 0x447   :  { %v1052_v62 = vmul.f32 %v1050_v61, %v917_v60 }
 0x449   :  { %v1053_v0 = vmul.f32 %v1052_v62, %v1026_v50  ;;  %v1059_v30 = vrot.slane %v1052_v62, %v2120_v46 }
 0x44b   :  { %v1054_v29 = vsub.f32 %v918_v63, %v1053_v0  ;;  %v1061_v39 = vmul.f32 %v1059_v30, %v929_v13  ;;  %v1062_v38 = vmul.f32 %v1059_v30, %v930_v12  ;;  %v1063_v1 = vmul.f32 %v1059_v30, %v931_v23 }
 0x44c   :  { %v1064_v2 = vmul.f32 %v1059_v30, %v932_v21 }
 0x44d   :  { %v1069_v3 = vrot.slane %v1054_v29, %v2120_v46 }
 0x44f   :  { %v1071_v4 = vadd.f32 %v1069_v3, %v1061_v39  ;;  %v1072_v5 = vadd.f32 %v1069_v3, %v1062_v38  ;;  %v1073_v6 = vadd.f32 %v1069_v3, %v1063_v1  ;;  %v1074_v7 = vadd.f32 %v1069_v3, %v1064_v2 }
 0x451   :  { %1075 = vst [vmem:[%s2313_s10] sm:$0xff] %v1071_v4  ;;  %1076 = vst [vmem:[%s2313_s10 + $0x8] sm:$0xff] %v1072_v5 }
 0x452   :  { %1077 = vst [vmem:[%s2313_s10 + $0x10] sm:$0xff] %v1073_v6  ;;  %1078 = vst [vmem:[%s2313_s10 + $0x18] sm:$0xff] %v1074_v7 }

</bundles_post_ra>
